<compile_context>
chip_gen: v5e
topology: v5e:2x2
jax: 0.10.0
libtpu: 0.0.40
codegen_flags: <defaults>
</compile_context>

<pallas_src>
import functools

import jax
import jax.numpy as jnp
import numpy as np
from jax.experimental import pallas as pl
from jax.experimental.pallas import tpu as pltpu


OUT_PAD = 128  # lane-dense output slab width (one full vreg lane dimension)


# ----------------------------------------------------------------------------
# Pallas kernel: MLP hot path + quadratic-form uncertainty, one batch tile
# ----------------------------------------------------------------------------
def _uncertainty_kernel(x_ref, w1_ref, b1_ref, w2p_ref, b2p_ref,
                        a11_ref, av_ref, out_ref, *, out_col):
    # hidden_features = relu(x @ W1 + b1): bf16 operands, f32 accumulation.
    h32 = jnp.dot(x_ref[...], w1_ref[...],
                  preferred_element_type=jnp.float32) + b1_ref[...]
    h32 = jnp.maximum(h32, 0.0)                       # (TB, H) f32
    h16 = h32.astype(jnp.bfloat16)                    # MXU operand copy

    # prediction, already lane-padded to OUT_PAD columns (cols >= OUT are 0).
    slab = jnp.dot(h16, w2p_ref[...],
                   preferred_element_type=jnp.float32) + b2p_ref[...]

    # Quadratic form without the ones-column and without rank-1 matmuls:
    #   u' = sum(h * (h @ A11 + (a12 + a21)^T), -1)     (a22 added outside)
    t = jnp.dot(h16, a11_ref[...], preferred_element_type=jnp.float32)
    unc = jnp.sum(h32 * (t + av_ref[...]), axis=1, keepdims=True)   # (TB, 1)

    # Pack uncertainty into lane `out_col` of the prediction slab so the
    # epilogue is a single full-width (lane-dense) store.
    col = jax.lax.broadcasted_iota(jnp.int32, slab.shape, 1)
    out_ref[...] = jnp.where(col == out_col, unc, slab).astype(out_ref.dtype)


# ----------------------------------------------------------------------------
# Wrapper: split inv_cov, pack lane-dense weights, batch-tiled pallas_call
# ----------------------------------------------------------------------------
@functools.partial(jax.jit, static_argnames=("block_b",))
def uncertainty_forward(x, w1, b1, w2, b2, inv_cov, *, block_b=128):
    """UncertaintyModel.forward -> (prediction, uncertainty)."""
    B, IN = x.shape
    H = w1.shape[1]
    O = w2.shape[1]
    assert O < OUT_PAD, "prediction width + 1 must fit the 128-lane slab"

    # Constructor-time glue: split the augmented inverse covariance so the
    # kernel never concatenates a ones-column.
    a11 = inv_cov[:H, :H]
    av = (inv_cov[:H, H] + inv_cov[H, :H]).reshape(1, H)   # (a12 + a21)^T row
    a22 = inv_cov[H, H]                                    # added post-kernel

    # Lane-dense packed last-layer weights: cols [0:O] = W2 / b2, rest zero.
    w2p = jnp.zeros((H, OUT_PAD), jnp.float32).at[:, :O].set(w2)
    b2p = jnp.zeros((1, OUT_PAD), jnp.float32).at[:, :O].set(b2.reshape(1, O))

    # bf16 operands for the MXU (f32 accumulation happens inside the kernel).
    x16 = x.astype(jnp.bfloat16)
    w1_16 = w1.astype(jnp.bfloat16)
    w2p_16 = w2p.astype(jnp.bfloat16)
    a11_16 = a11.astype(jnp.bfloat16)

    # Pad the batch up to a whole number of tiles.
    nb = pl.cdiv(B, block_b)
    b_pad = nb * block_b
    if b_pad != B:
        x16 = jnp.pad(x16, ((0, b_pad - B), (0, 0)))

    flops = 2 * b_pad * H * (IN + OUT_PAD + H) + 4 * b_pad * H
    bytes_accessed = (x16.size * 2 + w1_16.size * 2 + b1.size * 4
                      + w2p_16.size * 2 + b2p.size * 4 + a11_16.size * 2
                      + av.size * 4 + b_pad * OUT_PAD * 4)

    slab = pl.pallas_call(
        functools.partial(_uncertainty_kernel, out_col=O),
        grid=(nb,),
        in_specs=[
            pl.BlockSpec((block_b, IN), lambda i: (i, 0)),     # x batch tile
            pl.BlockSpec((IN, H), lambda i: (0, 0)),           # W1 (resident)
            pl.BlockSpec((1, H), lambda i: (0, 0)),            # b1
            pl.BlockSpec((H, OUT_PAD), lambda i: (0, 0)),      # W2 (packed)
            pl.BlockSpec((1, OUT_PAD), lambda i: (0, 0)),      # b2 (packed)
            pl.BlockSpec((H, H), lambda i: (0, 0)),            # A11
            pl.BlockSpec((1, H), lambda i: (0, 0)),            # a12 + a21
        ],
        out_specs=pl.BlockSpec((block_b, OUT_PAD), lambda i: (i, 0)),
        out_shape=jax.ShapeDtypeStruct((b_pad, OUT_PAD), jnp.float32),
        compiler_params=pltpu.CompilerParams(
            dimension_semantics=("parallel",),
            vmem_limit_bytes=32 * 1024 * 1024,
        ),
        cost_estimate=pl.CostEstimate(
            flops=flops, transcendentals=0, bytes_accessed=bytes_accessed),
    )(x16, w1_16, b1, w2p_16, b2p, a11_16, av)

    pred = slab[:B, :O]
    unc = slab[:B, O:O + 1] + a22      # a22 add kept out of the kernel / VMEM
    return pred, unc


# ----------------------------------------------------------------------------
# References (plain JAX) for verification
# ----------------------------------------------------------------------------
def reference_forward(x, w1, b1, w2, b2, inv_cov):
    """Full-f32 reference of the original module semantics."""
    hp = jax.lax.Precision.HIGHEST
    h = jnp.maximum(jnp.dot(x, w1, precision=hp) + b1, 0.0)
    pred = jnp.dot(h, w2, precision=hp) + b2
    haug = jnp.concatenate([h, jnp.ones((x.shape[0], 1), x.dtype)], axis=1)
    unc = jnp.einsum("ij,jk,ik->i", haug, inv_cov, haug, precision=hp)[:, None]
    return pred, unc


def emulated_reference(x, w1, b1, w2, b2, inv_cov):
    """Reference applying the same bf16 operand rounding as the kernel."""
    hp = jax.lax.Precision.HIGHEST
    bf = lambda a: a.astype(jnp.bfloat16).astype(jnp.float32)
    H = w1.shape[1]
    h32 = jnp.maximum(jnp.dot(bf(x), bf(w1), precision=hp) + b1, 0.0)
    h16 = bf(h32)
    pred = jnp.dot(h16, bf(w2), precision=hp) + b2
    av = (inv_cov[:H, H] + inv_cov[H, :H]).reshape(1, H)
    t = jnp.dot(h16, bf(inv_cov[:H, :H]), precision=hp)
    unc = jnp.sum(h32 * (t + av), axis=1, keepdims=True) + inv_cov[H, H]
    return pred, unc


if __name__ == "__main__":
    # Small-but-tileable shapes: batch 256 tiled into two 128-row blocks.
    B, IN, HID, OUT, NTR = 256, 64, 128, 8, 512
    HSIZE = HID + 1  # last Linear has a bias -> augmented hidden size

    key = jax.random.PRNGKey(0)
    k1, k2, k3, k4, kx, kt = jax.random.split(key, 6)

    # Deterministic synthetic parameters (no checkpoint loading).
    w1 = jax.random.normal(k1, (IN, HID), jnp.float32) * 0.2
    b1 = jax.random.normal(k2, (1, HID), jnp.float32) * 0.1
    w2 = jax.random.normal(k3, (HID, OUT), jnp.float32) * 0.2
    b2 = jax.random.normal(k4, (1, OUT), jnp.float32) * 0.1

    # Synthetic "training" pass to build the covariance buffer, then
    # set_hyperparameters(C, sigma):  inv_cov = C * inv(cov + sigma^2 I).
    # TODO(synk): covariance accumulation / torch.linalg.inv are one-off
    # constructor-time glue, kept in plain JAX rather than the Pallas kernel.
    xtr = jax.random.normal(kt, (NTR, IN), jnp.float32)
    htr = jnp.maximum(xtr @ w1 + b1, 0.0)
    htr_aug = jnp.concatenate([htr, jnp.ones((NTR, 1), jnp.float32)], axis=1)
    covariance = htr_aug.T @ htr_aug
    C, sigma = 1.0, 1.0
    inv_cov = C * jnp.linalg.inv(
        covariance + sigma ** 2 * jnp.eye(HSIZE, dtype=jnp.float32))

    # Forward input.
    x = jax.random.normal(kx, (B, IN), jnp.float32)

    pred, unc = uncertainty_forward(x, w1, b1, w2, b2, inv_cov)
    pred, unc = jax.block_until_ready((pred, unc))
    assert pred.shape == (B, OUT) and unc.shape == (B, 1)

    # (1) Tight check vs a reference with identical bf16 operand rounding
    #     (verifies the kernel algebra / lane packing / batch tiling).
    pred_e, unc_e = emulated_reference(x, w1, b1, w2, b2, inv_cov)
    np.testing.assert_allclose(np.asarray(pred), np.asarray(pred_e),
                               rtol=2e-3, atol=2e-3)
    np.testing.assert_allclose(np.asarray(unc), np.asarray(unc_e),
                               rtol=2e-3, atol=2e-3)

    # (2) Looser check vs the full-f32 module semantics (bf16 operand budget).
    pred_r, unc_r = reference_forward(x, w1, b1, w2, b2, inv_cov)
    np.testing.assert_allclose(np.asarray(pred), np.asarray(pred_r),
                               rtol=1e-1, atol=1e-1)
    np.testing.assert_allclose(np.asarray(unc), np.asarray(unc_r),
                               rtol=1e-1, atol=1e-1)

    print("KERNEL_OK")
</pallas_src>

<mosaic_0001>
module attributes {stable_mosaic.version = 11 : i64} {
  func.func @_uncertainty_kernel(%arg0: i32, %arg1: memref<128x64xbf16, #tpu.memory_space<vmem>>, %arg2: memref<64x128xbf16, #tpu.memory_space<vmem>>, %arg3: memref<1x128xf32, #tpu.memory_space<vmem>>, %arg4: memref<128x128xbf16, #tpu.memory_space<vmem>>, %arg5: memref<1x128xf32, #tpu.memory_space<vmem>>, %arg6: memref<128x128xbf16, #tpu.memory_space<vmem>>, %arg7: memref<1x128xf32, #tpu.memory_space<vmem>>, %arg8: memref<128x128xf32, #tpu.memory_space<vmem>>) attributes {dimension_semantics = [#tpu.dimension_semantics<parallel>], iteration_bounds = array<i64: 2>, scalar_prefetch = 0 : i64, scratch_operands = 0 : i64, tpu.core_type = #tpu.core_type<tc>, window_params = [{transform_indices = @transform_0, window_bounds = array<i64: 128, 64>}, {pipeline_mode = #tpu.pipeline_mode<synchronous>, transform_indices = @transform_1, window_bounds = array<i64: 64, 128>}, {pipeline_mode = #tpu.pipeline_mode<synchronous>, transform_indices = @transform_2, window_bounds = array<i64: 1, 128>}, {pipeline_mode = #tpu.pipeline_mode<synchronous>, transform_indices = @transform_3, window_bounds = array<i64: 128, 128>}, {pipeline_mode = #tpu.pipeline_mode<synchronous>, transform_indices = @transform_4, window_bounds = array<i64: 1, 128>}, {pipeline_mode = #tpu.pipeline_mode<synchronous>, transform_indices = @transform_5, window_bounds = array<i64: 128, 128>}, {pipeline_mode = #tpu.pipeline_mode<synchronous>, transform_indices = @transform_6, window_bounds = array<i64: 1, 128>}, {transform_indices = @transform_7, window_bounds = array<i64: 128, 128>}]} {
    %c0 = arith.constant 0 : index
    %c0_0 = arith.constant 0 : index
    %0 = vector.load %arg1[%c0, %c0_0] : memref<128x64xbf16, #tpu.memory_space<vmem>>, vector<128x64xbf16>
    %c0_1 = arith.constant 0 : index
    %c0_2 = arith.constant 0 : index
    %1 = vector.load %arg2[%c0_1, %c0_2] : memref<64x128xbf16, #tpu.memory_space<vmem>>, vector<64x128xbf16>
    %cst = arith.constant dense<0.000000e+00> : vector<128x128xf32>
    %2 = tpu.matmul %0, %1, %cst {dimension_numbers = #tpu.dot_dimension_numbers<[1], [0], [0], [1], [0, 0, 1, 1], [], []>} : vector<128x64xbf16>, vector<64x128xbf16>, vector<128x128xf32> -> vector<128x128xf32>
    %c0_3 = arith.constant 0 : index
    %c0_4 = arith.constant 0 : index
    %3 = vector.load %arg3[%c0_3, %c0_4] : memref<1x128xf32, #tpu.memory_space<vmem>>, vector<1x128xf32>
    %4 = vector.broadcast %3 : vector<1x128xf32> to vector<128x128xf32>
    %5 = arith.addf %2, %4 : vector<128x128xf32>
    %cst_5 = arith.constant 0.000000e+00 : f32
    %6 = vector.broadcast %cst_5 : f32 to vector<128x128xf32>
    %7 = arith.maximumf %5, %6 : vector<128x128xf32>
    %8 = arith.truncf %7 : vector<128x128xf32> to vector<128x128xbf16>
    %c0_6 = arith.constant 0 : index
    %c0_7 = arith.constant 0 : index
    %9 = vector.load %arg4[%c0_6, %c0_7] : memref<128x128xbf16, #tpu.memory_space<vmem>>, vector<128x128xbf16>
    %cst_8 = arith.constant dense<0.000000e+00> : vector<128x128xf32>
    %10 = tpu.matmul %8, %9, %cst_8 {dimension_numbers = #tpu.dot_dimension_numbers<[1], [0], [0], [1], [0, 0, 1, 1], [], []>} : vector<128x128xbf16>, vector<128x128xbf16>, vector<128x128xf32> -> vector<128x128xf32>
    %c0_9 = arith.constant 0 : index
    %c0_10 = arith.constant 0 : index
    %11 = vector.load %arg5[%c0_9, %c0_10] : memref<1x128xf32, #tpu.memory_space<vmem>>, vector<1x128xf32>
    %12 = vector.broadcast %11 : vector<1x128xf32> to vector<128x128xf32>
    %13 = arith.addf %10, %12 : vector<128x128xf32>
    %c0_11 = arith.constant 0 : index
    %c0_12 = arith.constant 0 : index
    %14 = vector.load %arg6[%c0_11, %c0_12] : memref<128x128xbf16, #tpu.memory_space<vmem>>, vector<128x128xbf16>
    %cst_13 = arith.constant dense<0.000000e+00> : vector<128x128xf32>
    %15 = tpu.matmul %8, %14, %cst_13 {dimension_numbers = #tpu.dot_dimension_numbers<[1], [0], [0], [1], [0, 0, 1, 1], [], []>} : vector<128x128xbf16>, vector<128x128xbf16>, vector<128x128xf32> -> vector<128x128xf32>
    %c0_14 = arith.constant 0 : index
    %c0_15 = arith.constant 0 : index
    %16 = vector.load %arg7[%c0_14, %c0_15] : memref<1x128xf32, #tpu.memory_space<vmem>>, vector<1x128xf32>
    %17 = vector.broadcast %16 : vector<1x128xf32> to vector<128x128xf32>
    %18 = arith.addf %15, %17 : vector<128x128xf32>
    %19 = arith.mulf %7, %18 : vector<128x128xf32>
    %cst_16 = arith.constant dense<0.000000e+00> : vector<128xf32>
    %20 = vector.multi_reduction <add>, %19, %cst_16 [1] : vector<128x128xf32> to vector<128xf32>
    %21 = vector.shape_cast %20 : vector<128xf32> to vector<128x1xf32>
    %22 = tpu.iota {dimensions = array<i32: 1>} : vector<128x128xi32>
    %c8_i32 = arith.constant 8 : i32
    %23 = vector.broadcast %c8_i32 : i32 to vector<128x128xi32>
    %24 = arith.cmpi eq, %22, %23 : vector<128x128xi32>
    %25 = vector.shape_cast %21 : vector<128x1xf32> to vector<128x1xf32>
    %26 = vector.broadcast %25 : vector<128x1xf32> to vector<128x128xf32>
    %27 = arith.select %24, %26, %13 : vector<128x128xi1>, vector<128x128xf32>
    %c0_17 = arith.constant 0 : index
    %c0_18 = arith.constant 0 : index
    %28 = vector.load %arg8[%c0_17, %c0_18] : memref<128x128xf32, #tpu.memory_space<vmem>>, vector<128x128xf32>
    tpu.vector_store %arg8[%c0_17, %c0_18], %27 {strides = array<i32>} : memref<128x128xf32, #tpu.memory_space<vmem>>, vector<128x128xf32>,
    return
  }
  func.func @transform_0(%arg0: i32) -> (i32, i32) {
    %c0_i32 = arith.constant 0 : i32
    %c0_i32_0 = arith.constant 0 : i32
    return %arg0, %c0_i32 : i32, i32
  }
  func.func @transform_1(%arg0: i32) -> (i32, i32) {
    %c0_i32 = arith.constant 0 : i32
    %c0_i32_0 = arith.constant 0 : i32
    %c0_i32_1 = arith.constant 0 : i32
    return %c0_i32, %c0_i32_0 : i32, i32
  }
  func.func @transform_2(%arg0: i32) -> (i32, i32) {
    %c0_i32 = arith.constant 0 : i32
    %c0_i32_0 = arith.constant 0 : i32
    %c0_i32_1 = arith.constant 0 : i32
    return %c0_i32, %c0_i32_0 : i32, i32
  }
  func.func @transform_3(%arg0: i32) -> (i32, i32) {
    %c0_i32 = arith.constant 0 : i32
    %c0_i32_0 = arith.constant 0 : i32
    %c0_i32_1 = arith.constant 0 : i32
    return %c0_i32, %c0_i32_0 : i32, i32
  }
  func.func @transform_4(%arg0: i32) -> (i32, i32) {
    %c0_i32 = arith.constant 0 : i32
    %c0_i32_0 = arith.constant 0 : i32
    %c0_i32_1 = arith.constant 0 : i32
    return %c0_i32, %c0_i32_0 : i32, i32
  }
  func.func @transform_5(%arg0: i32) -> (i32, i32) {
    %c0_i32 = arith.constant 0 : i32
    %c0_i32_0 = arith.constant 0 : i32
    %c0_i32_1 = arith.constant 0 : i32
    return %c0_i32, %c0_i32_0 : i32, i32
  }
  func.func @transform_6(%arg0: i32) -> (i32, i32) {
    %c0_i32 = arith.constant 0 : i32
    %c0_i32_0 = arith.constant 0 : i32
    %c0_i32_1 = arith.constant 0 : i32
    return %c0_i32, %c0_i32_0 : i32, i32
  }
  func.func @transform_7(%arg0: i32) -> (i32, i32) {
    %c0_i32 = arith.constant 0 : i32
    %c0_i32_0 = arith.constant 0 : i32
    return %arg0, %c0_i32 : i32, i32
  }
}

</mosaic_0001>

<bundles_post_ra>
// kernel: uncertainty_forward.1
= control target key start
LH: loop header
LB: loop body
LE: loop exit
PB: predicated region body
PF: predicated region fallthrough
CT: control target
= control target key end

     0   :  { %s1080_s24 = smov 0   ;;  %s1419_s0 = inlined_call_operand.vmem [shape: bf16[256,64], index: 0, kind: input, shape index: {}]   ;;  %s1420_s1 = inlined_call_operand.vmem [shape: bf16[64,128], index: 1, kind: input, shape index: {}]   ;;  %s1421_s2 = inlined_call_operand.vmem [shape: f32[1,128], index: 2, kind: input, shape index: {}]   ;;  %s1422_s3 = inlined_call_operand.vmem [shape: bf16[128,128], index: 3, kind: input, shape index: {}]   ;;  %s1423_s4 = inlined_call_operand.vmem [shape: f32[1,128], index: 4, kind: input, shape index: {}]   ;;  %s1424_s5 = inlined_call_operand.vmem [shape: bf16[128,128], index: 5, kind: input, shape index: {}]   ;;  %s1425_s6 = inlined_call_operand.vmem [shape: f32[1,128], index: 6, kind: input, shape index: {}]   ;;  %s1426_s7 = inlined_call_operand.vmem [shape: f32[256,128], index: 7, kind: output, shape index: {}]  }
   0x1 LB: > { %s846_s25 = sadd.s32 4294967295, %s1038_s24   ;;  %p850_p0 = scmp.ge.s32.totalorder %s1038_s24, 1  ;;  %s1038_s24 = sphi %s1080_s24, %s17_s24  }
   0x2   : > { %p238_p1 = scmp.lt.s32.totalorder %s1038_s24, 3 }
   0x4   : > { %p239_p2 = pnand %p850_p0, %p238_p1 }
   0x5   : > { %s851_s28 = sshll.u32 (!%p239_p2), %s846_s25, 4 }
   0x6   : > { %242 = sbr.rel (%p239_p2) target bundleno = 573 (0x23d), region = 48  ;;  %p271_p3 = scmp.lt.s32.totalorder (!%p239_p2), %s851_s28, 31 }
   0xb   : > { %v988_v0 = vld [vmem:[%s1420_s1 + $0x18] sm:$0xff]  ;;  %v987_v1 = vld [vmem:[%s1420_s1 + $0x10] sm:$0xff]  ;;  %s1428_s28 = smov (!%p271_p3, %s851_s28), 31  ;;  %v986_v2 = vld [vmem:[%s1420_s1 + $0x8] sm:$0xff]  ;;  %vm375_vm0 = vcmask 523264  }
   0xc   : > { %404 = vmatpush.bf16.msra.mxu0 %v988_v0  ;;  %s852_s10 = sshll.u32 %s1428_s28, 2  ;;  %v985_v3 = vld [vmem:[%s1420_s1] sm:$0xff]  ;;  %v996_v9 = vld [vmem:[%s1422_s3 + $0x38] sm:$0xff]  ;;  %v995_v12 = vld [vmem:[%s1422_s3 + $0x30] sm:$0xff]  ;;  %s854_s12 = sshll.u32 %s1428_s28, 3 }
   0xd   : > { %s1106_s15 = scalar_lea.vmem %s1419_s0, %s852_s10  ;;  %v1004_v10 = vld [vmem:[%s1424_s5 + $0x38] sm:$0xff]  ;;  %541 = vmatpush.bf16.msra.mxu1 %v996_v9  ;;  %1005 = vmatpush.bf16.msra.mxu3 %v996_v9  ;;  %v1003_v13 = vld [vmem:[%s1424_s5 + $0x30] sm:$0xff]  ;;  %v994_v14 = vld [vmem:[%s1422_s3 + $0x28] sm:$0xff]  ;;  %s1333_s16 = scalar_lea.vmem %s1426_s7, %s854_s12 }
   0xe   : > { %v977_v4 = vld [vmem:[%s1106_s15] sm:$0xff]  ;;  %v978_v5 = vld [vmem:[%s1106_s15 + $0x8] sm:$0xff]  ;;  %v979_v6 = vld [vmem:[%s1106_s15 + $0x10] sm:$0xff]  ;;  %658 = vmatpush.bf16.msra.mxu2 %v1004_v10 }
   0xf   : > { %v980_v7 = vld [vmem:[%s1106_s15 + $0x18] sm:$0xff]  ;;  %v981_v8 = vld [vmem:[%s1106_s15 + $0x20] sm:$0xff]  ;;  %v982_v11 = vld [vmem:[%s1106_s15 + $0x28] sm:$0xff] }
  0x10   : > { %405 = vmatpush.bf16.msra.mxu0 %v987_v1  ;;  %v1002_v15 = vld [vmem:[%s1424_s5 + $0x28] sm:$0xff]  ;;  %v993_v16 = vld [vmem:[%s1422_s3 + $0x20] sm:$0xff]  ;;  %v992_v18 = vld [vmem:[%s1422_s3 + $0x18] sm:$0xff] }
  0x11   : > { %542 = vmatpush.bf16.msra.mxu1 %v995_v12  ;;  %1006 = vmatpush.bf16.msra.mxu3 %v995_v12  ;;  %v1001_v17 = vld [vmem:[%s1424_s5 + $0x20] sm:$0xff]  ;;  %v1000_v19 = vld [vmem:[%s1424_s5 + $0x18] sm:$0xff]  ;;  %v983_v20 = vld [vmem:[%s1106_s15 + $0x30] sm:$0xff] }
  0x12   : > { %659 = vmatpush.bf16.msra.mxu2 %v1003_v13  ;;  %v991_v21 = vld [vmem:[%s1422_s3 + $0x10] sm:$0xff]  ;;  %v990_v23 = vld [vmem:[%s1422_s3 + $0x8] sm:$0xff]  ;;  %v989_v25 = vld [vmem:[%s1422_s3] sm:$0xff] }
  0x13   : > { %v999_v22 = vld [vmem:[%s1424_s5 + $0x10] sm:$0xff]  ;;  %v998_v24 = vld [vmem:[%s1424_s5 + $0x8] sm:$0xff]  ;;  %v997_v26 = vld [vmem:[%s1424_s5] sm:$0xff] }
  0x14   : > { %406 = vmatpush.bf16.msra.mxu0 %v986_v2  ;;  %v984_v27 = vld [vmem:[%s1106_s15 + $0x38] sm:$0xff]  ;;  %v1175_v29 = vld [vmem:[%s1421_s2] ss:$0 sm:$0xff] }
  0x15   : > { %543 = vmatpush.bf16.msra.mxu1 %v994_v14  ;;  %1007 = vmatpush.bf16.msra.mxu3 %v994_v14 }
  0x16   : > { %660 = vmatpush.bf16.msra.mxu2 %v1002_v15 }
  0x18   : > { %407 = vmatpush.bf16.msra.mxu0 %v985_v3 }
  0x19   : > { %544 = vmatpush.bf16.msra.mxu1 %v993_v16  ;;  %1008 = vmatpush.bf16.msra.mxu3 %v993_v16 }
  0x1a   : > { %661 = vmatpush.bf16.msra.mxu2 %v1001_v17 }
  0x1b   : > { %903 = vmatmul.msk.bf16.vlgmr.msra.gmra.mxu0 %vm375_vm0, %v977_v4 }
  0x1d   : > { %545 = vmatpush.bf16.msra.mxu1 %v992_v18  ;;  %1009 = vmatpush.bf16.msra.mxu3 %v992_v18 }
  0x1e   : > { %662 = vmatpush.bf16.msra.mxu2 %v1000_v19 }
  0x21   : > { %546 = vmatpush.bf16.msra.mxu1 %v991_v21  ;;  %1010 = vmatpush.bf16.msra.mxu3 %v991_v21  ;;  %v1276_v21 = vld [vmem:[%s1425_s6] ss:$0 sm:$0xff] }
  0x22   : > { %663 = vmatpush.bf16.msra.mxu2 %v999_v22 }
  0x25   : > { %547 = vmatpush.bf16.msra.mxu1 %v990_v23  ;;  %1011 = vmatpush.bf16.msra.mxu3 %v990_v23 }
  0x26   : > { %664 = vmatpush.bf16.msra.mxu2 %v998_v24 }
  0x29   : > { %548 = vmatpush.bf16.msra.mxu1 %v989_v25  ;;  %1012 = vmatpush.bf16.msra.mxu3 %v989_v25 }
  0x2a   : > { %665 = vmatpush.bf16.msra.mxu2 %v997_v26 }
  0x2b   : > { %904 = vmatmul.msk.bf16.gmra.mxu0 %vm375_vm0, %v978_v5 }
  0x2d   : > { %1013 = vmatpush.bf16.msrb.mxu3 %v1004_v10 }
  0x31   : > { %1014 = vmatpush.bf16.msrb.mxu3 %v1003_v13 }
  0x35   : > { %1015 = vmatpush.bf16.msrb.mxu3 %v1002_v15 }
  0x39   : > { %1016 = vmatpush.bf16.msrb.mxu3 %v1001_v17 }
  0x3b   : > { %905 = vmatmul.msk.bf16.gmra.mxu0 %vm375_vm0, %v979_v6 }
  0x3d   : > { %1017 = vmatpush.bf16.msrb.mxu3 %v1000_v19 }
  0x41   : > { %1018 = vmatpush.bf16.msrb.mxu3 %v999_v22 }
  0x45   : > { %1019 = vmatpush.bf16.msrb.mxu3 %v998_v24 }
  0x49   : > { %1020 = vmatpush.bf16.msrb.mxu3 %v997_v26 }
  0x4b   : > { %906 = vmatmul.msk.bf16.gmra.mxu0 %vm375_vm0, %v980_v7 }
  0x5b   : > { %907 = vmatmul.msk.bf16.gmra.mxu0 %vm375_vm0, %v981_v8 }
  0x6b   : > { %908 = vmatmul.msk.bf16.gmra.mxu0 %vm375_vm0, %v982_v11 }
  0x7b   : > { %909 = vmatmul.msk.bf16.gmra.mxu0 %vm375_vm0, %v983_v20 }
  0x8b   : > { %910 = vmatmul.msk.bf16.gmra.mxu0 %vm375_vm0, %v984_v27 }
  0x98   : > { %v409_v28 = vpop.f32.mrf.mxu0 }
  0x99   : > { %v1178_v30 = vadd.f32 %v1175_v29, %v409_v28 }
  0x9b   : > { %v449_v33 = vmax.f32 %v1178_v30, 0.0 }
  0xa0   : > { %v411_v31 = vpop.f32.mrf.mxu0 }
  0xa1   : > { %v1181_v32 = vadd.f32 %v1175_v29, %v411_v31 }
  0xa3   : > { %v450_v34 = vmax.f32 %v1181_v32, 0.0 }
  0xa5   : > { %v465_v35 = vpack.c.bf16 %v450_v34, %v449_v33 }
  0xa7   : > { %549 = vmatmul.bf16.vlgmr.msra.gmra.mxu1 %v465_v35  ;;  %666 = vmatmul.bf16.vlgmr.msra.gmra.mxu2 %v465_v35 }
  0xa8   : > { %v414_v36 = vpop.f32.mrf.mxu0 }
  0xa9   : > { %v1190_v37 = vadd.f32 %v1175_v29, %v414_v36 }
  0xab   : > { %v451_v40 = vmax.f32 %v1190_v37, 0.0 }
  0xb0   : > { %v416_v38 = vpop.f32.mrf.mxu0 }
  0xb1   : > { %v1193_v39 = vadd.f32 %v1175_v29, %v416_v38 }
  0xb3   : > { %v452_v41 = vmax.f32 %v1193_v39, 0.0 }
  0xb5   : > { %v466_v42 = vpack.c.bf16 %v452_v41, %v451_v40 }
  0xb7   : > { %554 = vmatmul.bf16.gmra.mxu1 %v466_v42  ;;  %671 = vmatmul.bf16.gmra.mxu2 %v466_v42 }
  0xb8   : > { %v419_v43 = vpop.f32.mrf.mxu0 }
  0xb9   : > { %v1202_v44 = vadd.f32 %v1175_v29, %v419_v43 }
  0xbb   : > { %v453_v47 = vmax.f32 %v1202_v44, 0.0 }
  0xc0   : > { %v421_v45 = vpop.f32.mrf.mxu0 }
  0xc1   : > { %v1205_v46 = vadd.f32 %v1175_v29, %v421_v45 }
  0xc3   : > { %v454_v48 = vmax.f32 %v1205_v46, 0.0 }
  0xc5   : > { %v467_v49 = vpack.c.bf16 %v454_v48, %v453_v47 }
  0xc7   : > { %559 = vmatmul.bf16.gmra.mxu1 %v467_v49  ;;  %676 = vmatmul.bf16.gmra.mxu2 %v467_v49 }
  0xc8   : > { %v424_v50 = vpop.f32.mrf.mxu0 }
  0xc9   : > { %v1214_v51 = vadd.f32 %v1175_v29, %v424_v50 }
  0xcb   : > { %v455_v54 = vmax.f32 %v1214_v51, 0.0 }
  0xd0   : > { %v426_v52 = vpop.f32.mrf.mxu0 }
  0xd1   : > { %v1217_v53 = vadd.f32 %v1175_v29, %v426_v52 }
  0xd3   : > { %v456_v55 = vmax.f32 %v1217_v53, 0.0 }
  0xd5   : > { %v468_v56 = vpack.c.bf16 %v456_v55, %v455_v54 }
  0xd7   : > { %564 = vmatmul.bf16.gmra.mxu1 %v468_v56  ;;  %681 = vmatmul.bf16.gmra.mxu2 %v468_v56 }
  0xd8   : > { %v429_v57 = vpop.f32.mrf.mxu0 }
  0xd9   : > { %v1226_v58 = vadd.f32 %v1175_v29, %v429_v57 }
  0xdb   : > { %v457_v61 = vmax.f32 %v1226_v58, 0.0 }
  0xe0   : > { %v431_v59 = vpop.f32.mrf.mxu0 }
  0xe1   : > { %v1229_v60 = vadd.f32 %v1175_v29, %v431_v59 }
  0xe3   : > { %v458_v62 = vmax.f32 %v1229_v60, 0.0 }
  0xe5   : > { %v469_v63 = vpack.c.bf16 %v458_v62, %v457_v61 }
  0xe7   : > { %569 = vmatmul.bf16.gmra.mxu1 %v469_v63  ;;  %686 = vmatmul.bf16.gmra.mxu2 %v469_v63 }
  0xe8   : > { %v434_v0 = vpop.f32.mrf.mxu0 }
  0xe9   : > { %v1238_v1 = vadd.f32 %v1175_v29, %v434_v0 }
  0xeb   : > { %v459_v4 = vmax.f32 %v1238_v1, 0.0 }
  0xf0   : > { %v436_v2 = vpop.f32.mrf.mxu0 }
  0xf1   : > { %v1241_v3 = vadd.f32 %v1175_v29, %v436_v2  ;;  %v1325_v2 = vld [vmem:[%s1423_s4] ss:$0 sm:$0xff] }
  0xf3   : > { %v460_v5 = vmax.f32 %v1241_v3, 0.0 }
  0xf5   : > { %v470_v6 = vpack.c.bf16 %v460_v5, %v459_v4 }
  0xf7   : > { %574 = vmatmul.bf16.gmra.mxu1 %v470_v6  ;;  %691 = vmatmul.bf16.gmra.mxu2 %v470_v6 }
  0xf8   : > { %v439_v7 = vpop.f32.mrf.mxu0 }
  0xf9   : > { %v1250_v8 = vadd.f32 %v1175_v29, %v439_v7 }
  0xfb   : > { %v461_v11 = vmax.f32 %v1250_v8, 0.0 }
 0x100   : > { %v441_v9 = vpop.f32.mrf.mxu0 }
 0x101   : > { %v1253_v10 = vadd.f32 %v1175_v29, %v441_v9 }
 0x103   : > { %v462_v12 = vmax.f32 %v1253_v10, 0.0 }
 0x105   : > { %v471_v13 = vpack.c.bf16 %v462_v12, %v461_v11 }
 0x107   : > { %579 = vmatmul.bf16.vlgmr.msra.gmra.mxu3 %v471_v13 }
 0x108   : > { %v444_v14 = vpop.f32.mrf.mxu0 }
 0x109   : > { %v1262_v15 = vadd.f32 %v1175_v29, %v444_v14 }
 0x10b   : > { %v463_v18 = vmax.f32 %v1262_v15, 0.0 }
 0x110   : > { %v446_v16 = vpop.f32.mrf.mxu0 }
 0x111   : > { %v1265_v17 = vadd.f32 %v1175_v29, %v446_v16 }
 0x113   : > { %v464_v19 = vmax.f32 %v1265_v17, 0.0 }
 0x115   : > { %v472_v20 = vpack.c.bf16 %v464_v19, %v463_v18 }
 0x117   : > { %584 = vmatmul.bf16.gmra.mxu3 %v472_v20 }
 0x124   : > { %v550_v58 = vpop.f32.mrf.mxu1 }
 0x125   : > { %v551_v3 = vadd.f32 %v1325_v2, %v550_v58 }
 0x127   : > { %696 = vmatmul.bf16.vlgmr.msrb.gmra.mxu3 %v471_v13 }
 0x12a   : > { %v667_v22 = vpop.f32.mrf.mxu2 }
 0x12b   : > { %v668_v23 = vadd.f32 %v1276_v21, %v667_v22 }
 0x12c   : > { %v552_v60 = vpop.f32.mrf.mxu1 }
 0x12d   : > { %v707_v24 = vmul.f32 %v668_v23, %v449_v33  ;;  %v553_v9 = vadd.f32 %v1325_v2, %v552_v60 }
 0x12f   : > { %723 = vadd.xlane.f32.xlu0 %v707_v24 }
 0x132   : > { %v669_v25 = vpop.f32.mrf.mxu2 }
 0x133   : > { %v670_v26 = vadd.f32 %v1276_v21, %v669_v25 }
 0x134   : > { %v555_v0 = vpop.f32.mrf.mxu1 }
 0x135   : > { %v708_v27 = vmul.f32 %v670_v26, %v450_v34  ;;  %v556_v24 = vadd.f32 %v1325_v2, %v555_v0 }
 0x137   : > { %701 = vmatmul.bf16.gmra.mxu3 %v472_v20  ;;  %725 = vadd.xlane.f32.xlu0 %v708_v27 }
 0x13a   : > { %v672_v28 = vpop.f32.mrf.mxu2 }
 0x13b   : > { %v673_v29 = vadd.f32 %v1276_v21, %v672_v28 }
 0x13c   : > { %v557_v7 = vpop.f32.mrf.mxu1 }
 0x13d   : > { %v709_v31 = vmul.f32 %v673_v29, %v451_v40  ;;  %v558_v8 = vadd.f32 %v1325_v2, %v557_v7 }
 0x13f   : > { %727 = vadd.xlane.f32.xlu1 %v709_v31 }
 0x142   : > { %v674_v35 = vpop.f32.mrf.mxu2 }
 0x143   : > { %v675_v30 = vadd.f32 %v1276_v21, %v674_v35 }
 0x144   : > { %v560_v23 = vpop.f32.mrf.mxu1 }
 0x145   : > { %v710_v33 = vmul.f32 %v675_v30, %v452_v41  ;;  %v561_v10 = vadd.f32 %v1325_v2, %v560_v23 }
 0x147   : > { %729 = vadd.xlane.f32.xlu1 %v710_v33 }
 0x14a   : > { %v677_v36 = vpop.f32.mrf.mxu2 }
 0x14b   : > { %v678_v32 = vadd.f32 %v1276_v21, %v677_v36 }
 0x14d   : > { %v711_v34 = vmul.f32 %v678_v32, %v453_v47 }
 0x14f   : > { %731 = vadd.xlane.f32.xlu2 %v711_v34 }
 0x152   : > { %v679_v38 = vpop.f32.mrf.mxu2 }
 0x153   : > { %v680_v42 = vadd.f32 %v1276_v21, %v679_v38 }
 0x155   : > { %v712_v37 = vmul.f32 %v680_v42, %v454_v48 }
 0x157   : > { %733 = vadd.xlane.f32.xlu2 %v712_v37 }
 0x15a   : > { %v682_v40 = vpop.f32.mrf.mxu2 }
 0x15b   : > { %v683_v43 = vadd.f32 %v1276_v21, %v682_v40 }
 0x15d   : > { %v713_v39 = vmul.f32 %v683_v43, %v455_v54 }
 0x15f   : > { %735 = vadd.xlane.f32.xlu0 %v713_v39 }
 0x162   : > { %v684_v41 = vpop.f32.mrf.mxu2 }
 0x163   : > { %v685_v45 = vadd.f32 %v1276_v21, %v684_v41 }
 0x165   : > { %v714_v44 = vmul.f32 %v685_v45, %v456_v55 }
 0x167   : > { %737 = vadd.xlane.f32.xlu1 %v714_v44 }
 0x16a   : > { %v687_v47 = vpop.f32.mrf.mxu2 }
 0x16b   : > { %v688_v49 = vadd.f32 %v1276_v21, %v687_v47 }
 0x16d   : > { %v715_v46 = vmul.f32 %v688_v49, %v457_v61 }
 0x16f   : > { %739 = vadd.xlane.f32.xlu2 %v715_v46 }
 0x172   : > { %v689_v48 = vpop.f32.mrf.mxu2 }
 0x173   : > { %v690_v50 = vadd.f32 %v1276_v21, %v689_v48 }
 0x175   : > { %v716_v51 = vmul.f32 %v690_v50, %v458_v62  ;;  %v755_v62 = vlaneseq }
 0x177   : > { %741 = vadd.xlane.f32.xlu0 %v716_v51  ;;  %v1320_v1 = vand.u32 127, %v755_v62 }
 0x179   : > { %vm757_vm1 = vcmp.eq.s32.totalorder %v1320_v1, 8 }
 0x17a   : > { %v692_v52 = vpop.f32.mrf.mxu2 }
 0x17b   : > { %v693_v54 = vadd.f32 %v1276_v21, %v692_v52 }
 0x17d   : > { %v717_v53 = vmul.f32 %v693_v54, %v459_v4 }
 0x17f   : > { %743 = vadd.xlane.f32.xlu1 %v717_v53 }
 0x182   : > { %v694_v55 = vpop.f32.mrf.mxu2 }
 0x183   : > { %v695_v56 = vadd.f32 %v1276_v21, %v694_v55 }
 0x185   : > { %v718_v57 = vmul.f32 %v695_v56, %v460_v5 }
 0x187   : > { %745 = vadd.xlane.f32.xlu2 %v718_v57 }
 0x18a   : > { %v1314_v59 = vpop.f32.mrf.mxu3 }
 0x18b   : > { %v581_v0 = vadd.f32 %v1325_v2, %v1314_v59 }
 0x192   : > { %v1316_v61 = vpop.f32.mrf.mxu3 }
 0x19a   : > { %v1318_v63 = vpop.f32.mrf.mxu3 }
 0x1a2   : > { %v1335_v4 = vpop.f32.mrf.mxu3  ;;  %v724_v5 = vpop.xlane.xlu0 %723 }
 0x1a3   : > { %v758_v6 = vsel %vm757_vm1, %v724_v5, %v551_v3 }
 0x1a4   : > { %774 = vst [vmem:[%s1333_s16] sm:$0xff] %v758_v6  ;;  %v583_v6 = vadd.f32 %v1325_v2, %v1316_v61 }
 0x1aa   : > { %v697_v13 = vpop.f32.mrf.mxu3  ;;  %v726_v14 = vpop.xlane.xlu0 %725 }
 0x1ab   : > { %v698_v16 = vadd.f32 %v1276_v21, %v697_v13  ;;  %v759_v20 = vsel %vm757_vm1, %v726_v14, %v553_v9  ;;  %v586_v13 = vadd.f32 %v1325_v2, %v1318_v63 }
 0x1ac   : > { %775 = vst [vmem:[%s1333_s16 + $0x8] sm:$0xff] %v759_v20 }
 0x1ad   : > { %v719_v22 = vmul.f32 %v698_v16, %v461_v11  ;;  %v562_v11 = vpop.f32.mrf.mxu1  ;;  %v588_v16 = vadd.f32 %v1325_v2, %v1335_v4 }
 0x1ae   : > { %v563_v15 = vadd.f32 %v1325_v2, %v562_v11 }
 0x1af   : > { %747 = vadd.xlane.f32.xlu0 %v719_v22 }
 0x1b2   : > { %v699_v25 = vpop.f32.mrf.mxu3  ;;  %v728_v26 = vpop.xlane.xlu1 %727 }
 0x1b3   : > { %v700_v27 = vadd.f32 %v1276_v21, %v699_v25  ;;  %v760_v28 = vsel %vm757_vm1, %v728_v26, %v556_v24 }
 0x1b4   : > { %776 = vst [vmem:[%s1333_s16 + $0x10] sm:$0xff] %v760_v28 }
 0x1b5   : > { %v720_v29 = vmul.f32 %v700_v27, %v462_v12  ;;  %v565_v42 = vpop.f32.mrf.mxu1 }
 0x1b7   : > { %749 = vadd.xlane.f32.xlu1 %v720_v29 }
 0x1ba   : > { %v702_v31 = vpop.f32.mrf.mxu3  ;;  %v730_v35 = vpop.xlane.xlu1 %729 }
 0x1bb   : > { %v703_v30 = vadd.f32 %v1276_v21, %v702_v31  ;;  %v761_v33 = vsel %vm757_vm1, %v730_v35, %v558_v8 }
 0x1bc   : > { %777 = vst [vmem:[%s1333_s16 + $0x18] sm:$0xff] %v761_v33 }
 0x1bd   : > { %v721_v36 = vmul.f32 %v703_v30, %v463_v18  ;;  %v567_v43 = vpop.f32.mrf.mxu1 }
 0x1bf   : > { %751 = vadd.xlane.f32.xlu2 %v721_v36 }
 0x1c2   : > { %v704_v12 = vpop.f32.mrf.mxu3  ;;  %v732_v32 = vpop.xlane.xlu2 %731 }
 0x1c3   : > { %v705_v34 = vadd.f32 %v1276_v21, %v704_v12  ;;  %v762_v38 = vsel %vm757_vm1, %v732_v32, %v561_v10  ;;  %v566_v21 = vadd.f32 %v1325_v2, %v565_v42 }
 0x1c4   : > { %778 = vst [vmem:[%s1333_s16 + $0x20] sm:$0xff] %v762_v38 }
 0x1c5   : > { %v722_v37 = vmul.f32 %v705_v34, %v464_v19  ;;  %v570_v17 = vpop.f32.mrf.mxu1  ;;  %v568_v19 = vadd.f32 %v1325_v2, %v567_v43 }
 0x1c6   : > { %v571_v47 = vadd.f32 %v1325_v2, %v570_v17 }
 0x1c7   : > { %753 = vadd.xlane.f32.xlu0 %v722_v37 }
 0x1ca   : > { %v734_v18 = vpop.xlane.xlu2 %733 }
 0x1cb   : > { %v763_v40 = vsel %vm757_vm1, %v734_v18, %v563_v15 }
 0x1cc   : > { %779 = vst [vmem:[%s1333_s16 + $0x28] sm:$0xff] %v763_v40 }
 0x1cd   : > { %v572_v49 = vpop.f32.mrf.mxu1 }
 0x1ce   : > { %v573_v50 = vadd.f32 %v1325_v2, %v572_v49 }
 0x1d2   : > { %v736_v39 = vpop.xlane.xlu0 %735 }
 0x1d3   : > { %v764_v41 = vsel %vm757_vm1, %v736_v39, %v566_v21 }
 0x1d4   : > { %780 = vst [vmem:[%s1333_s16 + $0x30] sm:$0xff] %v764_v41 }
 0x1d5   : > { %v575_v54 = vpop.f32.mrf.mxu1 }
 0x1d6   : > { %v576_v53 = vadd.f32 %v1325_v2, %v575_v54 }
 0x1da   : > { %v738_v45 = vpop.xlane.xlu1 %737 }
 0x1db   : > { %v765_v44 = vsel %vm757_vm1, %v738_v45, %v568_v19 }
 0x1dc   : > { %781 = vst [vmem:[%s1333_s16 + $0x38] sm:$0xff] %v765_v44 }
 0x1dd   : > { %v577_v57 = vpop.f32.mrf.mxu1 }
 0x1de   : > { %v578_v58 = vadd.f32 %v1325_v2, %v577_v57 }
 0x1e2   : > { %v740_v46 = vpop.xlane.xlu2 %739 }
 0x1e3   : > { %v766_v48 = vsel %vm757_vm1, %v740_v46, %v571_v47 }
 0x1e4   : > { %782 = vst [vmem:[%s1333_s16 + $0x40] sm:$0xff] %v766_v48 }
 0x1ea   : > { %v742_v51 = vpop.xlane.xlu0 %741 }
 0x1eb   : > { %v767_v52 = vsel %vm757_vm1, %v742_v51, %v573_v50 }
 0x1ec   : > { %783 = vst [vmem:[%s1333_s16 + $0x48] sm:$0xff] %v767_v52 }
 0x1f2   : > { %v744_v55 = vpop.xlane.xlu1 %743 }
 0x1f3   : > { %v768_v56 = vsel %vm757_vm1, %v744_v55, %v576_v53 }
 0x1f4   : > { %784 = vst [vmem:[%s1333_s16 + $0x50] sm:$0xff] %v768_v56 }
 0x1fa   : > { %v746_v60 = vpop.xlane.xlu2 %745 }
 0x1fb   : > { %v769_v62 = vsel %vm757_vm1, %v746_v60, %v578_v58 }
 0x1fc   : > { %785 = vst [vmem:[%s1333_s16 + $0x58] sm:$0xff] %v769_v62 }
 0x222   : > { %v748_v3 = vpop.xlane.xlu0 %747 }
 0x223   : > { %v770_v5 = vsel %vm757_vm1, %v748_v3, %v581_v0 }
 0x224   : > { %786 = vst [vmem:[%s1333_s16 + $0x60] sm:$0xff] %v770_v5 }
 0x22a   : > { %v750_v7 = vpop.xlane.xlu1 %749 }
 0x22b   : > { %v771_v9 = vsel %vm757_vm1, %v750_v7, %v583_v6 }
 0x22c   : > { %787 = vst [vmem:[%s1333_s16 + $0x68] sm:$0xff] %v771_v9 }
 0x232   : > { %v752_v14 = vpop.xlane.xlu2 %751 }
 0x233   : > { %v772_v59 = vsel %vm757_vm1, %v752_v14, %v586_v13 }
 0x234   : > { %788 = vst [vmem:[%s1333_s16 + $0x70] sm:$0xff] %v772_v59 }
 0x23a   : > { %v754_v20 = vpop.xlane.xlu0 %753 }
 0x23b   : > { %v773_v61 = vsel %vm757_vm1, %v754_v20, %v588_v16 }
 0x23c   : > { %789 = vst [vmem:[%s1333_s16 + $0x78] sm:$0xff] %v773_v61 }
 0x23d PF: > { %s17_s24 = sadd.s32 1, %s1038_s24  }
 0x23e   : > { %p14_p4 = scmp.ge.s32.totalorder %s17_s24, 4  }
 0x240   :  { %16 = sbr.rel (!%p14_p4) target bundleno = 1 (0x1), region = 78 }

</bundles_post_ra>
